<compile_context>
chip_gen: v7x
topology: tpu7x:2x2x1
jax: 0.10.0
libtpu: 0.0.40
codegen_flags: <defaults>
</compile_context>

<pallas_src>
import jax
import jax.numpy as jnp
from jax.experimental import pallas as pl
from jax.experimental.pallas import tpu as pltpu

KH = KW = 3  # conv kernel spatial size


def conv2d_relu_pallas(x_nchw, weight, bias):
    """x_nchw: (N, Cin, H, W); weight: (Cout, Cin, 3, 3); bias: (Cout,)."""
    N, Cin, H, W = x_nchw.shape
    Cout = weight.shape[0]
    HW = H * W
    T = KH * KW * Cin  # number of conv taps (27)

    # ---- producer (single fused XLA op): pad + im2col + Cout replication ----
    xp = jnp.pad(x_nchw, ((0, 0), (0, 0), (1, 1), (1, 1)))  # (N, Cin, H+2, W+2)
    planes = []
    for kh in range(KH):
        for kw in range(KW):
            for ci in range(Cin):
                planes.append(xp[:, ci, kh:kh + H, kw:kw + W].reshape(N, HW))
    xcols = jnp.stack(planes, axis=0)                        # (T, N, HW)
    xcols = jnp.broadcast_to(xcols[:, :, None, :], (T, N, Cout, HW))
    xcols = xcols.reshape(T, N * Cout, HW)                   # rows = n*Cout + co

    # weights: (Cout,Cin,KH,KW) -> (KH,KW,Cin,Cout) -> (T,Cout) -> lane-broadcast
    w_t = jnp.transpose(weight, (2, 3, 1, 0)).reshape(T, Cout)
    w_full = jnp.broadcast_to(w_t[:, :, None], (T, Cout, HW))   # (T, Cout, HW)
    b_full = jnp.broadcast_to(bias[:, None], (Cout, HW))        # (Cout, HW)

    def kernel(x_ref, w_ref, b_ref, o_ref):
        # x_ref: (T, Cout, HW)  im2col planes for this batch element (Cout-replicated)
        # w_ref: (T, Cout, HW)  per-tap weights, pre-broadcast along lanes
        # b_ref: (Cout, HW)     bias, pre-broadcast along lanes
        # o_ref: (Cout, HW)     NCHW output rows for this batch element
        acc = b_ref[...].astype(jnp.float32)        # bias folded into acc init
        for t in range(T):                          # fully unrolled: 27 aligned
            acc = acc + x_ref[t] * w_ref[t]         # full-tile loads + VALU FMAs
        o_ref[...] = jnp.maximum(acc, 0.0).astype(o_ref.dtype)

    out2d = pl.pallas_call(
        kernel,
        out_shape=jax.ShapeDtypeStruct((N * Cout, HW), x_nchw.dtype),
        grid_spec=pltpu.PrefetchScalarGridSpec(
            num_scalar_prefetch=0,
            grid=(N,),  # batch axis; shards across TensorCores on v7x
            in_specs=[
                pl.BlockSpec((T, Cout, HW), lambda n: (0, n, 0)),
                pl.BlockSpec((T, Cout, HW), lambda n: (0, 0, 0)),  # resident
                pl.BlockSpec((Cout, HW), lambda n: (0, 0)),        # resident
            ],
            out_specs=pl.BlockSpec((Cout, HW), lambda n: (n, 0)),
        ),
        compiler_params=pltpu.CompilerParams(
            dimension_semantics=("parallel",)),
    )(xcols, w_full, b_full)

    # (N*Cout, H*W) is already NCHW-contiguous: reshape is a free view,
    # no transpose dispatch.
    return out2d.reshape(N, Cout, H, W)


def reference_conv2d_relu(x_nchw, weight, bias):
    out = jax.lax.conv_general_dilated(
        x_nchw, weight, window_strides=(1, 1), padding="SAME",
        dimension_numbers=("NCHW", "OIHW", "NCHW"))
    out = out + bias.reshape(1, -1, 1, 1)
    return jnp.maximum(out, 0.0)


if __name__ == "__main__":
    key = jax.random.PRNGKey(0)
    k_x, k_w, k_b = jax.random.split(key, 3)

    # Small shapes consistent with the module: Cin=3, Cout=8 fixed by __init__.
    N, Cin, H, W = 2, 3, 16, 16
    Cout = 8

    x = jax.random.normal(k_x, (N, Cin, H, W), dtype=jnp.float32)
    weight = jax.random.normal(k_w, (Cout, Cin, KH, KW), dtype=jnp.float32) * 0.1
    bias = jax.random.normal(k_b, (Cout,), dtype=jnp.float32) * 0.1

    out = jax.block_until_ready(conv2d_relu_pallas(x, weight, bias))
    ref = jax.block_until_ready(reference_conv2d_relu(x, weight, bias))

    assert out.shape == (N, Cout, H, W), out.shape
    assert jnp.allclose(out, ref, atol=1e-5, rtol=1e-5), "mismatch vs reference"

    print("KERNEL_OK")
</pallas_src>

<mosaic_0001>
module attributes {stable_mosaic.version = 11 : i64} {
  func.func @kernel(%arg0: i32, %arg1: memref<27x8x256xf32, #tpu.memory_space<vmem>>, %arg2: memref<27x8x256xf32, #tpu.memory_space<vmem>>, %arg3: memref<8x256xf32, #tpu.memory_space<vmem>>, %arg4: memref<8x256xf32, #tpu.memory_space<vmem>>) attributes {dimension_semantics = [#tpu.dimension_semantics<parallel>], iteration_bounds = array<i64: 2>, scalar_prefetch = 0 : i64, scratch_operands = 0 : i64, tpu.core_type = #tpu.core_type<tc>, window_params = [{transform_indices = @transform_0, window_bounds = array<i64: 27, 8, 256>}, {pipeline_mode = #tpu.pipeline_mode<synchronous>, transform_indices = @transform_1, window_bounds = array<i64: 27, 8, 256>}, {pipeline_mode = #tpu.pipeline_mode<synchronous>, transform_indices = @transform_2, window_bounds = array<i64: 8, 256>}, {transform_indices = @transform_3, window_bounds = array<i64: 8, 256>}]} {
    %c0 = arith.constant 0 : index
    %c0_0 = arith.constant 0 : index
    %0 = vector.load %arg3[%c0, %c0_0] : memref<8x256xf32, #tpu.memory_space<vmem>>, vector<8x256xf32>
    %c0_1 = arith.constant 0 : index
    %c0_2 = arith.constant 0 : index
    %c0_3 = arith.constant 0 : index
    %1 = vector.load %arg1[%c0_1, %c0_2, %c0_3] : memref<27x8x256xf32, #tpu.memory_space<vmem>>, vector<1x8x256xf32>
    %2 = vector.shape_cast %1 : vector<1x8x256xf32> to vector<8x256xf32>
    %c0_4 = arith.constant 0 : index
    %c0_5 = arith.constant 0 : index
    %c0_6 = arith.constant 0 : index
    %3 = vector.load %arg2[%c0_4, %c0_5, %c0_6] : memref<27x8x256xf32, #tpu.memory_space<vmem>>, vector<1x8x256xf32>
    %4 = vector.shape_cast %3 : vector<1x8x256xf32> to vector<8x256xf32>
    %5 = arith.mulf %2, %4 : vector<8x256xf32>
    %6 = arith.addf %0, %5 : vector<8x256xf32>
    %c1 = arith.constant 1 : index
    %c0_7 = arith.constant 0 : index
    %c0_8 = arith.constant 0 : index
    %7 = vector.load %arg1[%c1, %c0_7, %c0_8] : memref<27x8x256xf32, #tpu.memory_space<vmem>>, vector<1x8x256xf32>
    %8 = vector.shape_cast %7 : vector<1x8x256xf32> to vector<8x256xf32>
    %c1_9 = arith.constant 1 : index
    %c0_10 = arith.constant 0 : index
    %c0_11 = arith.constant 0 : index
    %9 = vector.load %arg2[%c1_9, %c0_10, %c0_11] : memref<27x8x256xf32, #tpu.memory_space<vmem>>, vector<1x8x256xf32>
    %10 = vector.shape_cast %9 : vector<1x8x256xf32> to vector<8x256xf32>
    %11 = arith.mulf %8, %10 : vector<8x256xf32>
    %12 = arith.addf %6, %11 : vector<8x256xf32>
    %c2 = arith.constant 2 : index
    %c0_12 = arith.constant 0 : index
    %c0_13 = arith.constant 0 : index
    %13 = vector.load %arg1[%c2, %c0_12, %c0_13] : memref<27x8x256xf32, #tpu.memory_space<vmem>>, vector<1x8x256xf32>
    %14 = vector.shape_cast %13 : vector<1x8x256xf32> to vector<8x256xf32>
    %c2_14 = arith.constant 2 : index
    %c0_15 = arith.constant 0 : index
    %c0_16 = arith.constant 0 : index
    %15 = vector.load %arg2[%c2_14, %c0_15, %c0_16] : memref<27x8x256xf32, #tpu.memory_space<vmem>>, vector<1x8x256xf32>
    %16 = vector.shape_cast %15 : vector<1x8x256xf32> to vector<8x256xf32>
    %17 = arith.mulf %14, %16 : vector<8x256xf32>
    %18 = arith.addf %12, %17 : vector<8x256xf32>
    %c3 = arith.constant 3 : index
    %c0_17 = arith.constant 0 : index
    %c0_18 = arith.constant 0 : index
    %19 = vector.load %arg1[%c3, %c0_17, %c0_18] : memref<27x8x256xf32, #tpu.memory_space<vmem>>, vector<1x8x256xf32>
    %20 = vector.shape_cast %19 : vector<1x8x256xf32> to vector<8x256xf32>
    %c3_19 = arith.constant 3 : index
    %c0_20 = arith.constant 0 : index
    %c0_21 = arith.constant 0 : index
    %21 = vector.load %arg2[%c3_19, %c0_20, %c0_21] : memref<27x8x256xf32, #tpu.memory_space<vmem>>, vector<1x8x256xf32>
    %22 = vector.shape_cast %21 : vector<1x8x256xf32> to vector<8x256xf32>
    %23 = arith.mulf %20, %22 : vector<8x256xf32>
    %24 = arith.addf %18, %23 : vector<8x256xf32>
    %c4 = arith.constant 4 : index
    %c0_22 = arith.constant 0 : index
    %c0_23 = arith.constant 0 : index
    %25 = vector.load %arg1[%c4, %c0_22, %c0_23] : memref<27x8x256xf32, #tpu.memory_space<vmem>>, vector<1x8x256xf32>
    %26 = vector.shape_cast %25 : vector<1x8x256xf32> to vector<8x256xf32>
    %c4_24 = arith.constant 4 : index
    %c0_25 = arith.constant 0 : index
    %c0_26 = arith.constant 0 : index
    %27 = vector.load %arg2[%c4_24, %c0_25, %c0_26] : memref<27x8x256xf32, #tpu.memory_space<vmem>>, vector<1x8x256xf32>
    %28 = vector.shape_cast %27 : vector<1x8x256xf32> to vector<8x256xf32>
    %29 = arith.mulf %26, %28 : vector<8x256xf32>
    %30 = arith.addf %24, %29 : vector<8x256xf32>
    %c5 = arith.constant 5 : index
    %c0_27 = arith.constant 0 : index
    %c0_28 = arith.constant 0 : index
    %31 = vector.load %arg1[%c5, %c0_27, %c0_28] : memref<27x8x256xf32, #tpu.memory_space<vmem>>, vector<1x8x256xf32>
    %32 = vector.shape_cast %31 : vector<1x8x256xf32> to vector<8x256xf32>
    %c5_29 = arith.constant 5 : index
    %c0_30 = arith.constant 0 : index
    %c0_31 = arith.constant 0 : index
    %33 = vector.load %arg2[%c5_29, %c0_30, %c0_31] : memref<27x8x256xf32, #tpu.memory_space<vmem>>, vector<1x8x256xf32>
    %34 = vector.shape_cast %33 : vector<1x8x256xf32> to vector<8x256xf32>
    %35 = arith.mulf %32, %34 : vector<8x256xf32>
    %36 = arith.addf %30, %35 : vector<8x256xf32>
    %c6 = arith.constant 6 : index
    %c0_32 = arith.constant 0 : index
    %c0_33 = arith.constant 0 : index
    %37 = vector.load %arg1[%c6, %c0_32, %c0_33] : memref<27x8x256xf32, #tpu.memory_space<vmem>>, vector<1x8x256xf32>
    %38 = vector.shape_cast %37 : vector<1x8x256xf32> to vector<8x256xf32>
    %c6_34 = arith.constant 6 : index
    %c0_35 = arith.constant 0 : index
    %c0_36 = arith.constant 0 : index
    %39 = vector.load %arg2[%c6_34, %c0_35, %c0_36] : memref<27x8x256xf32, #tpu.memory_space<vmem>>, vector<1x8x256xf32>
    %40 = vector.shape_cast %39 : vector<1x8x256xf32> to vector<8x256xf32>
    %41 = arith.mulf %38, %40 : vector<8x256xf32>
    %42 = arith.addf %36, %41 : vector<8x256xf32>
    %c7 = arith.constant 7 : index
    %c0_37 = arith.constant 0 : index
    %c0_38 = arith.constant 0 : index
    %43 = vector.load %arg1[%c7, %c0_37, %c0_38] : memref<27x8x256xf32, #tpu.memory_space<vmem>>, vector<1x8x256xf32>
    %44 = vector.shape_cast %43 : vector<1x8x256xf32> to vector<8x256xf32>
    %c7_39 = arith.constant 7 : index
    %c0_40 = arith.constant 0 : index
    %c0_41 = arith.constant 0 : index
    %45 = vector.load %arg2[%c7_39, %c0_40, %c0_41] : memref<27x8x256xf32, #tpu.memory_space<vmem>>, vector<1x8x256xf32>
    %46 = vector.shape_cast %45 : vector<1x8x256xf32> to vector<8x256xf32>
    %47 = arith.mulf %44, %46 : vector<8x256xf32>
    %48 = arith.addf %42, %47 : vector<8x256xf32>
    %c8 = arith.constant 8 : index
    %c0_42 = arith.constant 0 : index
    %c0_43 = arith.constant 0 : index
    %49 = vector.load %arg1[%c8, %c0_42, %c0_43] : memref<27x8x256xf32, #tpu.memory_space<vmem>>, vector<1x8x256xf32>
    %50 = vector.shape_cast %49 : vector<1x8x256xf32> to vector<8x256xf32>
    %c8_44 = arith.constant 8 : index
    %c0_45 = arith.constant 0 : index
    %c0_46 = arith.constant 0 : index
    %51 = vector.load %arg2[%c8_44, %c0_45, %c0_46] : memref<27x8x256xf32, #tpu.memory_space<vmem>>, vector<1x8x256xf32>
    %52 = vector.shape_cast %51 : vector<1x8x256xf32> to vector<8x256xf32>
    %53 = arith.mulf %50, %52 : vector<8x256xf32>
    %54 = arith.addf %48, %53 : vector<8x256xf32>
    %c9 = arith.constant 9 : index
    %c0_47 = arith.constant 0 : index
    %c0_48 = arith.constant 0 : index
    %55 = vector.load %arg1[%c9, %c0_47, %c0_48] : memref<27x8x256xf32, #tpu.memory_space<vmem>>, vector<1x8x256xf32>
    %56 = vector.shape_cast %55 : vector<1x8x256xf32> to vector<8x256xf32>
    %c9_49 = arith.constant 9 : index
    %c0_50 = arith.constant 0 : index
    %c0_51 = arith.constant 0 : index
    %57 = vector.load %arg2[%c9_49, %c0_50, %c0_51] : memref<27x8x256xf32, #tpu.memory_space<vmem>>, vector<1x8x256xf32>
    %58 = vector.shape_cast %57 : vector<1x8x256xf32> to vector<8x256xf32>
    %59 = arith.mulf %56, %58 : vector<8x256xf32>
    %60 = arith.addf %54, %59 : vector<8x256xf32>
    %c10 = arith.constant 10 : index
    %c0_52 = arith.constant 0 : index
    %c0_53 = arith.constant 0 : index
    %61 = vector.load %arg1[%c10, %c0_52, %c0_53] : memref<27x8x256xf32, #tpu.memory_space<vmem>>, vector<1x8x256xf32>
    %62 = vector.shape_cast %61 : vector<1x8x256xf32> to vector<8x256xf32>
    %c10_54 = arith.constant 10 : index
    %c0_55 = arith.constant 0 : index
    %c0_56 = arith.constant 0 : index
    %63 = vector.load %arg2[%c10_54, %c0_55, %c0_56] : memref<27x8x256xf32, #tpu.memory_space<vmem>>, vector<1x8x256xf32>
    %64 = vector.shape_cast %63 : vector<1x8x256xf32> to vector<8x256xf32>
    %65 = arith.mulf %62, %64 : vector<8x256xf32>
    %66 = arith.addf %60, %65 : vector<8x256xf32>
    %c11 = arith.constant 11 : index
    %c0_57 = arith.constant 0 : index
    %c0_58 = arith.constant 0 : index
    %67 = vector.load %arg1[%c11, %c0_57, %c0_58] : memref<27x8x256xf32, #tpu.memory_space<vmem>>, vector<1x8x256xf32>
    %68 = vector.shape_cast %67 : vector<1x8x256xf32> to vector<8x256xf32>
    %c11_59 = arith.constant 11 : index
    %c0_60 = arith.constant 0 : index
    %c0_61 = arith.constant 0 : index
    %69 = vector.load %arg2[%c11_59, %c0_60, %c0_61] : memref<27x8x256xf32, #tpu.memory_space<vmem>>, vector<1x8x256xf32>
    %70 = vector.shape_cast %69 : vector<1x8x256xf32> to vector<8x256xf32>
    %71 = arith.mulf %68, %70 : vector<8x256xf32>
    %72 = arith.addf %66, %71 : vector<8x256xf32>
    %c12 = arith.constant 12 : index
    %c0_62 = arith.constant 0 : index
    %c0_63 = arith.constant 0 : index
    %73 = vector.load %arg1[%c12, %c0_62, %c0_63] : memref<27x8x256xf32, #tpu.memory_space<vmem>>, vector<1x8x256xf32>
    %74 = vector.shape_cast %73 : vector<1x8x256xf32> to vector<8x256xf32>
    %c12_64 = arith.constant 12 : index
    %c0_65 = arith.constant 0 : index
    %c0_66 = arith.constant 0 : index
    %75 = vector.load %arg2[%c12_64, %c0_65, %c0_66] : memref<27x8x256xf32, #tpu.memory_space<vmem>>, vector<1x8x256xf32>
    %76 = vector.shape_cast %75 : vector<1x8x256xf32> to vector<8x256xf32>
    %77 = arith.mulf %74, %76 : vector<8x256xf32>
    %78 = arith.addf %72, %77 : vector<8x256xf32>
    %c13 = arith.constant 13 : index
    %c0_67 = arith.constant 0 : index
    %c0_68 = arith.constant 0 : index
    %79 = vector.load %arg1[%c13, %c0_67, %c0_68] : memref<27x8x256xf32, #tpu.memory_space<vmem>>, vector<1x8x256xf32>
    %80 = vector.shape_cast %79 : vector<1x8x256xf32> to vector<8x256xf32>
    %c13_69 = arith.constant 13 : index
    %c0_70 = arith.constant 0 : index
    %c0_71 = arith.constant 0 : index
    %81 = vector.load %arg2[%c13_69, %c0_70, %c0_71] : memref<27x8x256xf32, #tpu.memory_space<vmem>>, vector<1x8x256xf32>
    %82 = vector.shape_cast %81 : vector<1x8x256xf32> to vector<8x256xf32>
    %83 = arith.mulf %80, %82 : vector<8x256xf32>
    %84 = arith.addf %78, %83 : vector<8x256xf32>
    %c14 = arith.constant 14 : index
    %c0_72 = arith.constant 0 : index
    %c0_73 = arith.constant 0 : index
    %85 = vector.load %arg1[%c14, %c0_72, %c0_73] : memref<27x8x256xf32, #tpu.memory_space<vmem>>, vector<1x8x256xf32>
    %86 = vector.shape_cast %85 : vector<1x8x256xf32> to vector<8x256xf32>
    %c14_74 = arith.constant 14 : index
    %c0_75 = arith.constant 0 : index
    %c0_76 = arith.constant 0 : index
    %87 = vector.load %arg2[%c14_74, %c0_75, %c0_76] : memref<27x8x256xf32, #tpu.memory_space<vmem>>, vector<1x8x256xf32>
    %88 = vector.shape_cast %87 : vector<1x8x256xf32> to vector<8x256xf32>
    %89 = arith.mulf %86, %88 : vector<8x256xf32>
    %90 = arith.addf %84, %89 : vector<8x256xf32>
    %c15 = arith.constant 15 : index
    %c0_77 = arith.constant 0 : index
    %c0_78 = arith.constant 0 : index
    %91 = vector.load %arg1[%c15, %c0_77, %c0_78] : memref<27x8x256xf32, #tpu.memory_space<vmem>>, vector<1x8x256xf32>
    %92 = vector.shape_cast %91 : vector<1x8x256xf32> to vector<8x256xf32>
    %c15_79 = arith.constant 15 : index
    %c0_80 = arith.constant 0 : index
    %c0_81 = arith.constant 0 : index
    %93 = vector.load %arg2[%c15_79, %c0_80, %c0_81] : memref<27x8x256xf32, #tpu.memory_space<vmem>>, vector<1x8x256xf32>
    %94 = vector.shape_cast %93 : vector<1x8x256xf32> to vector<8x256xf32>
    %95 = arith.mulf %92, %94 : vector<8x256xf32>
    %96 = arith.addf %90, %95 : vector<8x256xf32>
    %c16 = arith.constant 16 : index
    %c0_82 = arith.constant 0 : index
    %c0_83 = arith.constant 0 : index
    %97 = vector.load %arg1[%c16, %c0_82, %c0_83] : memref<27x8x256xf32, #tpu.memory_space<vmem>>, vector<1x8x256xf32>
    %98 = vector.shape_cast %97 : vector<1x8x256xf32> to vector<8x256xf32>
    %c16_84 = arith.constant 16 : index
    %c0_85 = arith.constant 0 : index
    %c0_86 = arith.constant 0 : index
    %99 = vector.load %arg2[%c16_84, %c0_85, %c0_86] : memref<27x8x256xf32, #tpu.memory_space<vmem>>, vector<1x8x256xf32>
    %100 = vector.shape_cast %99 : vector<1x8x256xf32> to vector<8x256xf32>
    %101 = arith.mulf %98, %100 : vector<8x256xf32>
    %102 = arith.addf %96, %101 : vector<8x256xf32>
    %c17 = arith.constant 17 : index
    %c0_87 = arith.constant 0 : index
    %c0_88 = arith.constant 0 : index
    %103 = vector.load %arg1[%c17, %c0_87, %c0_88] : memref<27x8x256xf32, #tpu.memory_space<vmem>>, vector<1x8x256xf32>
    %104 = vector.shape_cast %103 : vector<1x8x256xf32> to vector<8x256xf32>
    %c17_89 = arith.constant 17 : index
    %c0_90 = arith.constant 0 : index
    %c0_91 = arith.constant 0 : index
    %105 = vector.load %arg2[%c17_89, %c0_90, %c0_91] : memref<27x8x256xf32, #tpu.memory_space<vmem>>, vector<1x8x256xf32>
    %106 = vector.shape_cast %105 : vector<1x8x256xf32> to vector<8x256xf32>
    %107 = arith.mulf %104, %106 : vector<8x256xf32>
    %108 = arith.addf %102, %107 : vector<8x256xf32>
    %c18 = arith.constant 18 : index
    %c0_92 = arith.constant 0 : index
    %c0_93 = arith.constant 0 : index
    %109 = vector.load %arg1[%c18, %c0_92, %c0_93] : memref<27x8x256xf32, #tpu.memory_space<vmem>>, vector<1x8x256xf32>
    %110 = vector.shape_cast %109 : vector<1x8x256xf32> to vector<8x256xf32>
    %c18_94 = arith.constant 18 : index
    %c0_95 = arith.constant 0 : index
    %c0_96 = arith.constant 0 : index
    %111 = vector.load %arg2[%c18_94, %c0_95, %c0_96] : memref<27x8x256xf32, #tpu.memory_space<vmem>>, vector<1x8x256xf32>
    %112 = vector.shape_cast %111 : vector<1x8x256xf32> to vector<8x256xf32>
    %113 = arith.mulf %110, %112 : vector<8x256xf32>
    %114 = arith.addf %108, %113 : vector<8x256xf32>
    %c19 = arith.constant 19 : index
    %c0_97 = arith.constant 0 : index
    %c0_98 = arith.constant 0 : index
    %115 = vector.load %arg1[%c19, %c0_97, %c0_98] : memref<27x8x256xf32, #tpu.memory_space<vmem>>, vector<1x8x256xf32>
    %116 = vector.shape_cast %115 : vector<1x8x256xf32> to vector<8x256xf32>
    %c19_99 = arith.constant 19 : index
    %c0_100 = arith.constant 0 : index
    %c0_101 = arith.constant 0 : index
    %117 = vector.load %arg2[%c19_99, %c0_100, %c0_101] : memref<27x8x256xf32, #tpu.memory_space<vmem>>, vector<1x8x256xf32>
    %118 = vector.shape_cast %117 : vector<1x8x256xf32> to vector<8x256xf32>
    %119 = arith.mulf %116, %118 : vector<8x256xf32>
    %120 = arith.addf %114, %119 : vector<8x256xf32>
    %c20 = arith.constant 20 : index
    %c0_102 = arith.constant 0 : index
    %c0_103 = arith.constant 0 : index
    %121 = vector.load %arg1[%c20, %c0_102, %c0_103] : memref<27x8x256xf32, #tpu.memory_space<vmem>>, vector<1x8x256xf32>
    %122 = vector.shape_cast %121 : vector<1x8x256xf32> to vector<8x256xf32>
    %c20_104 = arith.constant 20 : index
    %c0_105 = arith.constant 0 : index
    %c0_106 = arith.constant 0 : index
    %123 = vector.load %arg2[%c20_104, %c0_105, %c0_106] : memref<27x8x256xf32, #tpu.memory_space<vmem>>, vector<1x8x256xf32>
    %124 = vector.shape_cast %123 : vector<1x8x256xf32> to vector<8x256xf32>
    %125 = arith.mulf %122, %124 : vector<8x256xf32>
    %126 = arith.addf %120, %125 : vector<8x256xf32>
    %c21 = arith.constant 21 : index
    %c0_107 = arith.constant 0 : index
    %c0_108 = arith.constant 0 : index
    %127 = vector.load %arg1[%c21, %c0_107, %c0_108] : memref<27x8x256xf32, #tpu.memory_space<vmem>>, vector<1x8x256xf32>
    %128 = vector.shape_cast %127 : vector<1x8x256xf32> to vector<8x256xf32>
    %c21_109 = arith.constant 21 : index
    %c0_110 = arith.constant 0 : index
    %c0_111 = arith.constant 0 : index
    %129 = vector.load %arg2[%c21_109, %c0_110, %c0_111] : memref<27x8x256xf32, #tpu.memory_space<vmem>>, vector<1x8x256xf32>
    %130 = vector.shape_cast %129 : vector<1x8x256xf32> to vector<8x256xf32>
    %131 = arith.mulf %128, %130 : vector<8x256xf32>
    %132 = arith.addf %126, %131 : vector<8x256xf32>
    %c22 = arith.constant 22 : index
    %c0_112 = arith.constant 0 : index
    %c0_113 = arith.constant 0 : index
    %133 = vector.load %arg1[%c22, %c0_112, %c0_113] : memref<27x8x256xf32, #tpu.memory_space<vmem>>, vector<1x8x256xf32>
    %134 = vector.shape_cast %133 : vector<1x8x256xf32> to vector<8x256xf32>
    %c22_114 = arith.constant 22 : index
    %c0_115 = arith.constant 0 : index
    %c0_116 = arith.constant 0 : index
    %135 = vector.load %arg2[%c22_114, %c0_115, %c0_116] : memref<27x8x256xf32, #tpu.memory_space<vmem>>, vector<1x8x256xf32>
    %136 = vector.shape_cast %135 : vector<1x8x256xf32> to vector<8x256xf32>
    %137 = arith.mulf %134, %136 : vector<8x256xf32>
    %138 = arith.addf %132, %137 : vector<8x256xf32>
    %c23 = arith.constant 23 : index
    %c0_117 = arith.constant 0 : index
    %c0_118 = arith.constant 0 : index
    %139 = vector.load %arg1[%c23, %c0_117, %c0_118] : memref<27x8x256xf32, #tpu.memory_space<vmem>>, vector<1x8x256xf32>
    %140 = vector.shape_cast %139 : vector<1x8x256xf32> to vector<8x256xf32>
    %c23_119 = arith.constant 23 : index
    %c0_120 = arith.constant 0 : index
    %c0_121 = arith.constant 0 : index
    %141 = vector.load %arg2[%c23_119, %c0_120, %c0_121] : memref<27x8x256xf32, #tpu.memory_space<vmem>>, vector<1x8x256xf32>
    %142 = vector.shape_cast %141 : vector<1x8x256xf32> to vector<8x256xf32>
    %143 = arith.mulf %140, %142 : vector<8x256xf32>
    %144 = arith.addf %138, %143 : vector<8x256xf32>
    %c24 = arith.constant 24 : index
    %c0_122 = arith.constant 0 : index
    %c0_123 = arith.constant 0 : index
    %145 = vector.load %arg1[%c24, %c0_122, %c0_123] : memref<27x8x256xf32, #tpu.memory_space<vmem>>, vector<1x8x256xf32>
    %146 = vector.shape_cast %145 : vector<1x8x256xf32> to vector<8x256xf32>
    %c24_124 = arith.constant 24 : index
    %c0_125 = arith.constant 0 : index
    %c0_126 = arith.constant 0 : index
    %147 = vector.load %arg2[%c24_124, %c0_125, %c0_126] : memref<27x8x256xf32, #tpu.memory_space<vmem>>, vector<1x8x256xf32>
    %148 = vector.shape_cast %147 : vector<1x8x256xf32> to vector<8x256xf32>
    %149 = arith.mulf %146, %148 : vector<8x256xf32>
    %150 = arith.addf %144, %149 : vector<8x256xf32>
    %c25 = arith.constant 25 : index
    %c0_127 = arith.constant 0 : index
    %c0_128 = arith.constant 0 : index
    %151 = vector.load %arg1[%c25, %c0_127, %c0_128] : memref<27x8x256xf32, #tpu.memory_space<vmem>>, vector<1x8x256xf32>
    %152 = vector.shape_cast %151 : vector<1x8x256xf32> to vector<8x256xf32>
    %c25_129 = arith.constant 25 : index
    %c0_130 = arith.constant 0 : index
    %c0_131 = arith.constant 0 : index
    %153 = vector.load %arg2[%c25_129, %c0_130, %c0_131] : memref<27x8x256xf32, #tpu.memory_space<vmem>>, vector<1x8x256xf32>
    %154 = vector.shape_cast %153 : vector<1x8x256xf32> to vector<8x256xf32>
    %155 = arith.mulf %152, %154 : vector<8x256xf32>
    %156 = arith.addf %150, %155 : vector<8x256xf32>
    %c26 = arith.constant 26 : index
    %c0_132 = arith.constant 0 : index
    %c0_133 = arith.constant 0 : index
    %157 = vector.load %arg1[%c26, %c0_132, %c0_133] : memref<27x8x256xf32, #tpu.memory_space<vmem>>, vector<1x8x256xf32>
    %158 = vector.shape_cast %157 : vector<1x8x256xf32> to vector<8x256xf32>
    %c26_134 = arith.constant 26 : index
    %c0_135 = arith.constant 0 : index
    %c0_136 = arith.constant 0 : index
    %159 = vector.load %arg2[%c26_134, %c0_135, %c0_136] : memref<27x8x256xf32, #tpu.memory_space<vmem>>, vector<1x8x256xf32>
    %160 = vector.shape_cast %159 : vector<1x8x256xf32> to vector<8x256xf32>
    %161 = arith.mulf %158, %160 : vector<8x256xf32>
    %162 = arith.addf %156, %161 : vector<8x256xf32>
    %cst = arith.constant 0.000000e+00 : f32
    %163 = vector.broadcast %cst : f32 to vector<8x256xf32>
    %164 = arith.maximumf %162, %163 : vector<8x256xf32>
    %c0_137 = arith.constant 0 : index
    %c0_138 = arith.constant 0 : index
    %165 = vector.load %arg4[%c0_137, %c0_138] : memref<8x256xf32, #tpu.memory_space<vmem>>, vector<8x256xf32>
    tpu.vector_store %arg4[%c0_137, %c0_138], %164 {strides = array<i32>} : memref<8x256xf32, #tpu.memory_space<vmem>>, vector<8x256xf32>,
    return
  }
  func.func @transform_0(%arg0: i32) -> (i32, i32, i32) {
    %c0_i32 = arith.constant 0 : i32
    %c0_i32_0 = arith.constant 0 : i32
    %c0_i32_1 = arith.constant 0 : i32
    return %c0_i32, %arg0, %c0_i32_0 : i32, i32, i32
  }
  func.func @transform_1(%arg0: i32) -> (i32, i32, i32) {
    %c0_i32 = arith.constant 0 : i32
    %c0_i32_0 = arith.constant 0 : i32
    %c0_i32_1 = arith.constant 0 : i32
    %c0_i32_2 = arith.constant 0 : i32
    return %c0_i32, %c0_i32_0, %c0_i32_1 : i32, i32, i32
  }
  func.func @transform_2(%arg0: i32) -> (i32, i32) {
    %c0_i32 = arith.constant 0 : i32
    %c0_i32_0 = arith.constant 0 : i32
    %c0_i32_1 = arith.constant 0 : i32
    return %c0_i32, %c0_i32_0 : i32, i32
  }
  func.func @transform_3(%arg0: i32) -> (i32, i32) {
    %c0_i32 = arith.constant 0 : i32
    %c0_i32_0 = arith.constant 0 : i32
    return %arg0, %c0_i32 : i32, i32
  }
}

</mosaic_0001>

<bundles_post_ra>
// kernel: tpu_custom_call.1
= control target key start
LH: loop header
LB: loop body
LE: loop exit
PB: predicated region body
PF: predicated region fallthrough
CT: control target
= control target key end

     0   :  { %8 = vsyncpa [#allocation3], 0  ;;  %s1212_s0 = inlined_call_operand.hbm [shape: f32[27,16,256], index: 0, kind: input, shape index: {}]   ;;  %s1213_s1 = inlined_call_operand.hbm [shape: f32[27,8,256], index: 1, kind: input, shape index: {}]   ;;  %s1214_s2 = inlined_call_operand.hbm [shape: f32[8,256], index: 2, kind: input, shape index: {}]   ;;  %s1215_s3 = inlined_call_operand.hbm [shape: f32[16,256], index: 3, kind: output, shape index: {}]  }
   0x1   :  { %10 = vsyncpa [#allocation3 + $0x1], 0 }
   0x2   :  { %11 = vsyncpa [#allocation6], 0 }
   0x3   :  { %12 = vsyncpa [#allocation4], 0 }
   0x4   :  { %14 = vsyncpa [#allocation4 + $0x1], 0  ;;  %s921_s12 = smov 0   ;;  %s923_s13 = smov 0  }
   0x5   :  { %s925_s14 = smov 0   ;;  %s927_s15 = smov 0  }
   0x6 LB: > { %s942_s16 = sadd.s32 4294967295, %s892_s15   ;;  %s594_s17 = sadd.s32 4294967294, %s892_s15   ;;  %s892_s15 = sphi %s927_s15, %s1241_s15   ;;  %s888_s14 = sphi %s925_s14, %s1240_s14   ;;  %s884_s13 = sphi %s923_s13, %s1239_s13   ;;  %s880_s12 = sphi %s921_s12, %s1238_s12  }
   0x7   : > { %s946_s18 = sadd.s32 1, %s892_s15   ;;  %s27_s19 = sadd.s32 1, %s888_s14 }
   0x8   : > { %s24_s20 = ssub.s32 %s892_s15, %s946_s18  ;;  %p34_p0 = scmp.ne.s32.totalorder %s888_s14, %s884_s13 }
   0x9   : > { %p25_p1 = scmp.eq.s32.totalorder %s24_s20, 0  ;;  %p35_p2 = scmp.eq.s32.totalorder %s892_s15, 0 }
   0xa   : > { %p40_p3 = scmp.ne.s32.totalorder %s884_s13, %s880_s12  ;;  %p1216_p4 = scmp.eq.s32.totalorder %s942_s16, 0 }
   0xb   : > { %s958_s21 = scalar_select %p25_p1, %s888_s14, %s27_s19  }
   0xc   : > { %p960_p5 = por %p35_p2, %p34_p0  ;;  %p966_p6 = por %p1216_p4, %p40_p3 }
   0xd   : > { %p106_p7 = scmp.eq.s32.totalorder %s942_s16, 1  ;;  %p112_p8 = scmp.eq.s32.totalorder %s594_s17, 1 }
   0xe   : > { %s1221_s22 = scalar_select %p960_p5, 1, 0 }
   0xf   : > { %s1222_s23 = scalar_select %p966_p6, 1, 0 }
  0x10   : > { %p595_p9 = scmp.ge.s32.totalorder %s892_s15, 1  ;;  %p119_p10 = scmp.lt.s32.totalorder %s892_s15, 3 }
  0x11   : > { %p973_p11 = por %p106_p7, %p34_p0  ;;  %p977_p12 = por %p112_p8, %p40_p3 }
  0x12   : > { %p981_p13 = pnand %p595_p9, %p119_p10  ;;  %s894_s27 = smov [#allocation5]  }
  0x13   : > { %s1223_s24 = scalar_select %p973_p11, 1, 0 }
  0x14   : > { %s1224_s25 = scalar_select %p977_p12, 1, 0 }
  0x15   : > { %s1225_s26 = scalar_select %p981_p13, 1, 0 }
  0x16   : > { %p678_p1 = pneg %p981_p13  ;;  %s131_s28 = sshll.u32 %s894_s27, 4  ;;  %s132_s28 = int_to_ptr.vmem [resolvable:$true] %s131_s28 }
  0x17   : > { %s895_s30 = smov [#allocation7]   ;;  %s736_s7 = scalar_lea.hbm %s1213_s1, 6912 }
  0x18   : > { %p989_p2 = pnand %p678_p1, %p1216_p4  ;;  %s145_s4 = sshll.u32 %s895_s30, 4  ;;  %s146_s4 = int_to_ptr.vmem [resolvable:$true] %s145_s4 }
  0x19   : > { %p737_p7 = scmp.ne.s32.totalorder %s1213_s1, %s736_s7  ;;  %p743_p1 = scmp.lt.u32.totalorder %s736_s7, %s1213_s1 }
  0x1a   : > { %p738_p8 = pneg %p989_p2 }
  0x1c   : > { %p739_p9 = pnand %p738_p8, %p737_p7 }
  0x1e   : > { %p740_p10 = pneg %p739_p9 }
  0x20   : > { %p745_p0 = pnand %p743_p1, %p740_p10 }
  0x22   : > { %748 = shalt.err (!%p745_p0)
}
  0x23   : > { %s749_s17 = scalar_lea.vmem %s132_s28, 6912  ;;  %p757_p11 = scmp.lt.s32.totalorder %s132_s28, %s132_s28 }
  0x24   : > { %p750_p4 = scmp.ne.s32.totalorder %s132_s28, %s749_s17  ;;  %p758_p6 = scmp.lt.s32.totalorder %s749_s17, %s749_s17 }
  0x26   : > { %p752_p3 = pnand %p750_p4, %p738_p8  ;;  %p759_p13 = por %p758_p6, %p757_p11 }
  0x28   : > { %p753_p12 = pneg %p752_p3 }
  0x2a   : > { %p760_p5 = pnand %p759_p13, %p753_p12 }
  0x2c   : > { %763 = shalt.err (!%p760_p5)
}
  0x2d   : > { %s896_s19 = smov 256   ;;  %s897_s20 = smov 16  }
  0x2e   : > { %681 = dma.hbm_to_vmem [thread:$0]  (!%p989_p2), %s1213_s1, 6912, %s132_s28, [#allocation6], %s896_s19, %s896_s19, %s897_s20  }
  0x2f   : > { %p1227_p4 = scmp.ne.s32.totalorder %s1221_s22, 0  ;;  %p1228_p0 = scmp.lt.s32.totalorder %s892_s15, 2 }
  0x30   : > { %s764_s8 = scalar_lea.hbm %s1214_s2, 256 }
  0x31   : > { %p1024_p3 = pnand %p1228_p0, %p1227_p4  ;;  %p765_p5 = scmp.ne.s32.totalorder %s1214_s2, %s764_s8 }
  0x32   : > { %p771_p12 = scmp.lt.u32.totalorder %s764_s8, %s1214_s2 }
  0x33   : > { %s1229_s5 = scalar_select %p1024_p3, 1, 0 }
  0x34   : > { %p767_p6 = pnand %p765_p5, %p738_p8 }
  0x36   : > { %p768_p11 = pneg %p767_p6 }
  0x38   : > { %p773_p13 = pnand %p771_p12, %p768_p11 }
  0x3a   : > { %776 = shalt.err (!%p773_p13)
}
  0x3b   : > { %s777_s11 = scalar_lea.vmem %s146_s4, 256  ;;  %p785_p1 = scmp.lt.s32.totalorder %s146_s4, %s146_s4 }
  0x3c   : > { %p778_p7 = scmp.ne.s32.totalorder %s146_s4, %s777_s11  ;;  %p786_p4 = scmp.lt.s32.totalorder %s777_s11, %s777_s11 }
  0x3e   : > { %p780_p9 = pnand %p778_p7, %p738_p8  ;;  %p787_p0 = por %p786_p4, %p785_p1 }
  0x40   : > { %p781_p10 = pneg %p780_p9 }
  0x42   : > { %p788_p3 = pnand %p787_p0, %p781_p10 }
  0x44   : > { %791 = shalt.err (!%p788_p3)
}
  0x45   : > { %684 = dma.hbm_to_vmem [thread:$0]  (!%p989_p2), %s1214_s2, 256, %s146_s4, [#allocation6]  }
  0x46   : > { %s156_s30 = sand.u32 1, %s888_s14   ;;  %s662_s7 = sshll.u32 %s892_s15, 8 }
  0x47   : > { %s664_s6 = smul.u32 432, %s156_s30  ;;  %s1053_s10 = scalar_lea.hbm %s1212_s0, %s662_s7 }
  0x48   : > { %s1057_s22 = scalar_lea.sflag [#allocation3], %s156_s30  ;;  %s792_s11 = scalar_lea.hbm %s1053_s10, 6912 }
  0x49   : > { %s160_s29 = scalar_lea.vmem [#allocation2], %s664_s6  ;;  %p793_p2 = scmp.ne.s32.totalorder %s1053_s10, %s792_s11 }
  0x4a   : > { %s167_s28 = sshll.u32 %s160_s29, 4  ;;  %p1230_p8 = scmp.ne.s32.totalorder %s1229_s5, 0  ;;  %s1055_s28 = int_to_ptr.vmem [resolvable:$true] %s167_s28 }
  0x4b   : > { %s797_s27 = scalar_lea.hbm %s1212_s0, 13824  ;;  %p798_p11 = scmp.lt.u32.totalorder %s1053_s10, %s1212_s0 }
  0x4c   : > { %p794_p3 = pneg %p1230_p8  ;;  %p799_p12 = scmp.lt.u32.totalorder %s797_s27, %s792_s11 }
  0x4d   : > { %p801_p7 = scmp.lt.u32.totalorder %s792_s11, %s1053_s10 }
  0x4e   : > { %p795_p5 = pnand %p794_p3, %p793_p2  ;;  %p800_p13 = por %p799_p12, %p798_p11 }
  0x50   : > { %p796_p6 = pneg %p795_p5  ;;  %p802_p9 = por %p801_p7, %p800_p13 }
  0x52   : > { %p803_p10 = pnand %p802_p9, %p796_p6 }
  0x54   : > { %806 = shalt.err (!%p803_p10)
}
  0x55   : > { %s807_s30 = scalar_lea.vmem %s1055_s28, 6912  ;;  %s898_s6 = smov [#allocation2]  }
  0x56   : > { %p808_p1 = scmp.ne.s32.totalorder %s1055_s28, %s807_s30  ;;  %s812_s9 = sshll.u32 %s898_s6, 4  ;;  %s813_s9 = int_to_ptr.vmem [resolvable:$false] %s812_s9 }
  0x57   : > { %s814_s29 = scalar_lea.vmem %s813_s9, 13824  ;;  %p815_p2 = scmp.lt.s32.totalorder %s1055_s28, %s813_s9 }
  0x58   : > { %p810_p4 = pnand %p808_p1, %p794_p3  ;;  %p816_p5 = scmp.lt.s32.totalorder %s814_s29, %s807_s30 }
  0x5a   : > { %p811_p0 = pneg %p810_p4  ;;  %p817_p11 = por %p816_p5, %p815_p2 }
  0x5c   : > { %p818_p12 = pnand %p817_p11, %p811_p0 }
  0x5e   : > { %821 = shalt.err (!%p818_p12)
}
  0x5f   : > { %s899_s11 = smov 512   ;;  %p1231_p3 = scmp.ne.s32.totalorder %s1225_s26, 0 }
  0x60   : > { %688 = dma.hbm_to_vmem [thread:$0]  (!%p1230_p8), %s1053_s10, 6912, %s1055_s28, %s1057_s22, %s899_s11, %s896_s19, %s897_s20  }
  0x61   : > { %179 = sbr.rel (%p1231_p3) target bundleno = 188 (0xbc), region = 32  ;;  %s1090_s4 = sand.u32 (!%p1231_p3), 1, %s884_s13  }
  0x62   : > { %s665_s17 = smul.u32 (!%p1231_p3), 432, %s1090_s4  ;;  %s182_s27 = scalar_lea.sflag (!%p1231_p3), [#allocation3], %s1090_s4 }
  0x63   : > { %p1232_p6 = scmp.ne.s32.totalorder (!%p1231_p3), %s1222_s23, 0 }
  0x64   : > { %s1094_s7 = scalar_lea.vmem (!%p1231_p3), [#allocation2], %s665_s17 }
  0x68   : > { %867 = dma.done.wait (%p1232_p6), %s182_s27, 6912  }
  0x69   : > { %869 = vsyncadd (%p1232_p6), %s182_s27, 4294960384  ;;  %p1233_p8 = scmp.eq.s32.totalorder %s942_s16, 0 }
  0x6b   : > { %871 = dma.done.wait (%p1233_p8), [#allocation6], 7168   ;;  %p1234_p13 = pmov %p1233_p8 }
  0x6c   : > { %v216_v0 = vld [vmem:[#allocation7] sm:$0xff]  ;;  %v220_v2 = vld [vmem:[#allocation5] sm:$0xff]  ;;  %v217_v44 = vld [vmem:[#allocation7 + $0x8] sm:$0xff]  ;;  %s604_s23 = sshll.u32 %s1090_s4, 4  ;;  %s663_s20 = sshll.u32 %s942_s16, 8 }
  0x6d   : > { %873 = vsyncadd (%p1234_p13), [#allocation6], 4294960128  ;;  %v218_v1 = vld [vmem:[%s1094_s7] sm:$0xff]  ;;  %v605_v4 = vld [vmem:[%s1094_s7 + $0x10] sm:$0xff]  ;;  %s1154_s26 = scalar_lea.vmem [#allocation8], %s604_s23  ;;  %s1169_s28 = scalar_lea.hbm %s1215_s3, %s663_s20 }
  0x6e   : > { %v222_v3 = vmul.f32 %v220_v2, %v218_v1  ;;  %v230_v5 = vld [vmem:[#allocation5 + $0x10] sm:$0xff]  ;;  %v240_v8 = vld [vmem:[#allocation5 + $0x20] sm:$0xff]  ;;  %v219_v45 = vld [vmem:[%s1094_s7 + $0x8] sm:$0xff]  ;;  %s505_s19 = sshll.u32 %s1154_s26, 4  ;;  %s491_s22 = scalar_lea.sflag [#allocation4], %s1090_s4  ;;  %s1164_s19 = int_to_ptr.vmem [resolvable:$true] %s505_s19 }
  0x6f   : > { %v607_v6 = vld [vmem:[%s1094_s7 + $0x20] sm:$0xff]  ;;  %v232_v7 = vmul.f32 %v605_v4, %v230_v5  ;;  %v609_v9 = vld [vmem:[%s1094_s7 + $0x30] sm:$0xff]  ;;  %v221_v48 = vld [vmem:[#allocation5 + $0x8] sm:$0xff]  ;;  %s822_s8 = scalar_lea.vmem %s1164_s19, 256  ;;  %p1235_p9 = scmp.ne.s32.totalorder %s1223_s24, 0 }
  0x70   : > { %v250_v10 = vld [vmem:[#allocation5 + $0x30] sm:$0xff]  ;;  %v224_v11 = vadd.f32 %v222_v3, %v216_v0  ;;  %v242_v12 = vmul.f32 %v607_v6, %v240_v8  ;;  %v260_v14 = vld [vmem:[#allocation5 + $0x40] sm:$0xff]  ;;  %v606_v49 = vld [vmem:[%s1094_s7 + $0x18] sm:$0xff]  ;;  %v223_v52 = vmul.f32 %v221_v48, %v219_v45  ;;  %p823_p7 = scmp.ne.s32.totalorder %s1164_s19, %s822_s8  ;;  %s900_s16 = smov [#allocation8]  }
  0x71   : > { %v611_v13 = vld [vmem:[%s1094_s7 + $0x40] sm:$0xff]  ;;  %v252_v16 = vmul.f32 %v609_v9, %v250_v10  ;;  %v613_v17 = vld [vmem:[%s1094_s7 + $0x50] sm:$0xff]  ;;  %v231_v50 = vld [vmem:[#allocation5 + $0x18] sm:$0xff]  ;;  %s826_s30 = sshll.u32 %s900_s16, 4  ;;  %s827_s30 = int_to_ptr.vmem [resolvable:$false] %s826_s30 }
  0x72   : > { %v234_v15 = vadd.f32 %v232_v7, %v224_v11  ;;  %v270_v18 = vld [vmem:[#allocation5 + $0x50] sm:$0xff]  ;;  %v262_v20 = vmul.f32 %v611_v13, %v260_v14  ;;  %v280_v22 = vld [vmem:[#allocation5 + $0x60] sm:$0xff]  ;;  %v233_v53 = vmul.f32 %v606_v49, %v231_v50  ;;  %v608_v54 = vld [vmem:[%s1094_s7 + $0x28] sm:$0xff]  ;;  %v225_v62 = vadd.f32 %v223_v52, %v217_v44  ;;  %p824_p10 = pnand %p823_p7, %p1235_p9  ;;  %s828_s6 = scalar_lea.vmem %s827_s30, 512 }
  0x73   : > { %v615_v21 = vld [vmem:[%s1094_s7 + $0x60] sm:$0xff]  ;;  %v272_v24 = vmul.f32 %v613_v17, %v270_v18  ;;  %v617_v25 = vld [vmem:[%s1094_s7 + $0x70] sm:$0xff]  ;;  %v241_v55 = vld [vmem:[#allocation5 + $0x28] sm:$0xff]  ;;  %p829_p4 = scmp.lt.s32.totalorder %s1164_s19, %s827_s30  ;;  %p830_p0 = scmp.lt.s32.totalorder %s828_s6, %s822_s8 }
  0x74   : > { %v244_v19 = vadd.f32 %v242_v12, %v234_v15  ;;  %v290_v26 = vld [vmem:[#allocation5 + $0x70] sm:$0xff]  ;;  %v282_v28 = vmul.f32 %v615_v21, %v280_v22  ;;  %v300_v30 = vld [vmem:[#allocation5 + $0x80] sm:$0xff]  ;;  %v610_v58 = vld [vmem:[%s1094_s7 + $0x38] sm:$0xff]  ;;  %v243_v63 = vmul.f32 %v608_v54, %v241_v55  ;;  %v235_v6 = vadd.f32 %v233_v53, %v225_v62  ;;  %p825_p1 = pneg %p824_p10 }
  0x75   : > { %v619_v29 = vld [vmem:[%s1094_s7 + $0x80] sm:$0xff]  ;;  %v292_v32 = vmul.f32 %v617_v25, %v290_v26  ;;  %v621_v33 = vld [vmem:[%s1094_s7 + $0x90] sm:$0xff]  ;;  %v251_v59 = vld [vmem:[#allocation5 + $0x38] sm:$0xff]  ;;  %p831_p2 = por %p830_p0, %p829_p4 }
  0x76   : > { %v254_v23 = vadd.f32 %v252_v16, %v244_v19  ;;  %v310_v34 = vld [vmem:[#allocation5 + $0x90] sm:$0xff]  ;;  %v302_v36 = vmul.f32 %v619_v29, %v300_v30  ;;  %v320_v38 = vld [vmem:[#allocation5 + $0xa0] sm:$0xff]  ;;  %v612_v2 = vld [vmem:[%s1094_s7 + $0x48] sm:$0xff]  ;;  %v253_v7 = vmul.f32 %v610_v58, %v251_v59  ;;  %v245_v14 = vadd.f32 %v243_v63, %v235_v6 }
  0x77   : > { %v623_v37 = vld [vmem:[%s1094_s7 + $0xa0] sm:$0xff]  ;;  %v312_v40 = vmul.f32 %v621_v33, %v310_v34  ;;  %v625_v41 = vld [vmem:[%s1094_s7 + $0xb0] sm:$0xff]  ;;  %v261_v3 = vld [vmem:[#allocation5 + $0x48] sm:$0xff]  ;;  %p832_p5 = pnand %p831_p2, %p825_p1 }
  0x78   : > { %v264_v27 = vadd.f32 %v262_v20, %v254_v23  ;;  %v330_v42 = vld [vmem:[#allocation5 + $0xb0] sm:$0xff]  ;;  %v322_v47 = vmul.f32 %v623_v37, %v320_v38  ;;  %v340_v51 = vld [vmem:[#allocation5 + $0xc0] sm:$0xff]  ;;  %v614_v10 = vld [vmem:[%s1094_s7 + $0x58] sm:$0xff]  ;;  %v263_v15 = vmul.f32 %v612_v2, %v261_v3  ;;  %v255_v22 = vadd.f32 %v253_v7, %v245_v14 }
  0x79   : > { %v627_v43 = vld [vmem:[%s1094_s7 + $0xc0] sm:$0xff]  ;;  %v332_v57 = vmul.f32 %v625_v41, %v330_v42  ;;  %v629_v60 = vld [vmem:[%s1094_s7 + $0xd0] sm:$0xff]  ;;  %v271_v11 = vld [vmem:[#allocation5 + $0x58] sm:$0xff] }
  0x7a   : > { %v274_v31 = vadd.f32 %v272_v24, %v264_v27  ;;  %v350_v61 = vld [vmem:[#allocation5 + $0xd0] sm:$0xff]  ;;  %v342_v1 = vmul.f32 %v627_v43, %v340_v51  ;;  %v360_v5 = vld [vmem:[#allocation5 + $0xe0] sm:$0xff]  ;;  %v616_v18 = vld [vmem:[%s1094_s7 + $0x68] sm:$0xff]  ;;  %v273_v23 = vmul.f32 %v614_v10, %v271_v11  ;;  %v265_v30 = vadd.f32 %v263_v15, %v255_v22 }
  0x7b   : > { %v631_v4 = vld [vmem:[%s1094_s7 + $0xe0] sm:$0xff]  ;;  %v352_v9 = vmul.f32 %v629_v60, %v350_v61  ;;  %v633_v12 = vld [vmem:[%s1094_s7 + $0xf0] sm:$0xff]  ;;  %v281_v19 = vld [vmem:[#allocation5 + $0x68] sm:$0xff] }
  0x7c   : > { %v284_v35 = vadd.f32 %v282_v28, %v274_v31  ;;  %v370_v13 = vld [vmem:[#allocation5 + $0xf0] sm:$0xff]  ;;  %v362_v17 = vmul.f32 %v631_v4, %v360_v5  ;;  %v380_v21 = vld [vmem:[#allocation5 + $0x100] sm:$0xff]  ;;  %v618_v26 = vld [vmem:[%s1094_s7 + $0x78] sm:$0xff]  ;;  %v283_v31 = vmul.f32 %v616_v18, %v281_v19  ;;  %v275_v38 = vadd.f32 %v273_v23, %v265_v30 }
  0x7d   : > { %v635_v20 = vld [vmem:[%s1094_s7 + $0x100] sm:$0xff]  ;;  %v372_v25 = vmul.f32 %v633_v12, %v370_v13  ;;  %v291_v27 = vld [vmem:[#allocation5 + $0x78] sm:$0xff]  ;;  %v637_v28 = vld [vmem:[%s1094_s7 + $0x110] sm:$0xff] }
  0x7e   : > { %v294_v39 = vadd.f32 %v292_v32, %v284_v35  ;;  %v390_v29 = vld [vmem:[#allocation5 + $0x110] sm:$0xff]  ;;  %v382_v33 = vmul.f32 %v635_v20, %v380_v21  ;;  %v620_v34 = vld [vmem:[%s1094_s7 + $0x88] sm:$0xff]  ;;  %v400_v37 = vld [vmem:[#allocation5 + $0x120] sm:$0xff] }
  0x7f   : > { %v301_v35 = vld [vmem:[#allocation5 + $0x88] sm:$0xff]  ;;  %v392_v41 = vmul.f32 %v637_v28, %v390_v29  ;;  %v311_v43 = vld [vmem:[#allocation5 + $0x98] sm:$0xff]  ;;  %v641_v44 = vld [vmem:[%s1094_s7 + $0x130] sm:$0xff] }
  0x80   : > { %v304_v46 = vadd.f32 %v302_v36, %v294_v39  ;;  %v639_v36 = vld [vmem:[%s1094_s7 + $0x120] sm:$0xff]  ;;  %v293_v39 = vmul.f32 %v618_v26, %v291_v27  ;;  %v622_v42 = vld [vmem:[%s1094_s7 + $0x98] sm:$0xff]  ;;  %v624_v50 = vld [vmem:[%s1094_s7 + $0xa8] sm:$0xff] }
  0x81   : > { %v410_v45 = vld [vmem:[#allocation5 + $0x130] sm:$0xff]  ;;  %v402_v49 = vmul.f32 %v639_v36, %v400_v37  ;;  %v321_v51 = vld [vmem:[#allocation5 + $0xa8] sm:$0xff]  ;;  %v420_v53 = vld [vmem:[#allocation5 + $0x140] sm:$0xff]  ;;  %v313_v55 = vmul.f32 %v622_v42, %v311_v43 }
  0x82   : > { %v314_v56 = vadd.f32 %v312_v40, %v304_v46  ;;  %v285_v46 = vadd.f32 %v283_v31, %v275_v38  ;;  %v643_v52 = vld [vmem:[%s1094_s7 + $0x140] sm:$0xff]  ;;  %v626_v58 = vld [vmem:[%s1094_s7 + $0xb8] sm:$0xff]  ;;  %v645_v60 = vld [vmem:[%s1094_s7 + $0x150] sm:$0xff]  ;;  %v323_v63 = vmul.f32 %v624_v50, %v321_v51 }
  0x83   : > { %v331_v59 = vld [vmem:[#allocation5 + $0xb8] sm:$0xff]  ;;  %v430_v61 = vld [vmem:[#allocation5 + $0x150] sm:$0xff]  ;;  %v341_v3 = vld [vmem:[#allocation5 + $0xc8] sm:$0xff] }
  0x84   : > { %v324_v0 = vadd.f32 %v322_v47, %v314_v56  ;;  %v303_v47 = vmul.f32 %v620_v34, %v301_v35  ;;  %v295_v54 = vadd.f32 %v293_v39, %v285_v46  ;;  %v628_v2 = vld [vmem:[%s1094_s7 + $0xc8] sm:$0xff]  ;;  %v647_v4 = vld [vmem:[%s1094_s7 + $0x160] sm:$0xff]  ;;  %v333_v7 = vmul.f32 %v626_v58, %v331_v59  ;;  %v630_v10 = vld [vmem:[%s1094_s7 + $0xd8] sm:$0xff] }
  0x85   : > { %v440_v5 = vld [vmem:[#allocation5 + $0x160] sm:$0xff]  ;;  %v351_v11 = vld [vmem:[#allocation5 + $0xd8] sm:$0xff]  ;;  %v450_v13 = vld [vmem:[#allocation5 + $0x170] sm:$0xff]  ;;  %v343_v15 = vmul.f32 %v628_v2, %v341_v3 }
  0x86   : > { %v334_v8 = vadd.f32 %v332_v57, %v324_v0  ;;  %v412_v57 = vmul.f32 %v641_v44, %v410_v45  ;;  %v305_v62 = vadd.f32 %v303_v47, %v295_v54  ;;  %v649_v12 = vld [vmem:[%s1094_s7 + $0x170] sm:$0xff]  ;;  %v632_v18 = vld [vmem:[%s1094_s7 + $0xe8] sm:$0xff]  ;;  %v651_v20 = vld [vmem:[%s1094_s7 + $0x180] sm:$0xff]  ;;  %v353_v23 = vmul.f32 %v630_v10, %v351_v11 }
  0x87   : > { %v361_v19 = vld [vmem:[#allocation5 + $0xe8] sm:$0xff]  ;;  %v460_v21 = vld [vmem:[#allocation5 + $0x180] sm:$0xff]  ;;  %v371_v27 = vld [vmem:[#allocation5 + $0xf8] sm:$0xff] }
  0x88   : > { %v344_v16 = vadd.f32 %v342_v1, %v334_v8  ;;  %v422_v1 = vmul.f32 %v643_v52, %v420_v53  ;;  %v315_v6 = vadd.f32 %v313_v55, %v305_v62  ;;  %v634_v26 = vld [vmem:[%s1094_s7 + $0xf8] sm:$0xff]  ;;  %v653_v28 = vld [vmem:[%s1094_s7 + $0x190] sm:$0xff]  ;;  %v363_v31 = vmul.f32 %v632_v18, %v361_v19  ;;  %v636_v34 = vld [vmem:[%s1094_s7 + $0x108] sm:$0xff] }
  0x89   : > { %v470_v29 = vld [vmem:[#allocation5 + $0x190] sm:$0xff]  ;;  %v381_v35 = vld [vmem:[#allocation5 + $0x108] sm:$0xff]  ;;  %v480_v37 = vld [vmem:[#allocation5 + $0x1a0] sm:$0xff]  ;;  %v373_v39 = vmul.f32 %v634_v26, %v371_v27 }
  0x8a   : > { %v354_v24 = vadd.f32 %v352_v9, %v344_v16  ;;  %v432_v9 = vmul.f32 %v645_v60, %v430_v61  ;;  %v325_v14 = vadd.f32 %v323_v63, %v315_v6  ;;  %v655_v36 = vld [vmem:[%s1094_s7 + $0x1a0] sm:$0xff]  ;;  %v638_v42 = vld [vmem:[%s1094_s7 + $0x118] sm:$0xff]  ;;  %v383_v45 = vmul.f32 %v636_v34, %v381_v35  ;;  %v644_v58 = vld [vmem:[%s1094_s7 + $0x148] sm:$0xff] }
  0x8b   : > { %v391_v43 = vld [vmem:[#allocation5 + $0x118] sm:$0xff]  ;;  %v482_v47 = vmul.f32 %v655_v36, %v480_v37  ;;  %v421_v59 = vld [vmem:[#allocation5 + $0x148] sm:$0xff] }
  0x8c   : > { %v364_v32 = vadd.f32 %v362_v17, %v354_v24  ;;  %v442_v17 = vmul.f32 %v647_v4, %v440_v5  ;;  %v335_v22 = vadd.f32 %v333_v7, %v325_v14  ;;  %v393_v51 = vmul.f32 %v638_v42, %v391_v43  ;;  %v642_v53 = vld [vmem:[%s1094_s7 + $0x138] sm:$0xff]  ;;  %v648_v3 = vld [vmem:[%s1094_s7 + $0x168] sm:$0xff] }
  0x8d   : > { %v411_v54 = vld [vmem:[#allocation5 + $0x138] sm:$0xff]  ;;  %v423_v2 = vmul.f32 %v644_v58, %v421_v59  ;;  %v441_v4 = vld [vmem:[#allocation5 + $0x168] sm:$0xff] }
  0x8e   : > { %v374_v40 = vadd.f32 %v372_v25, %v364_v32  ;;  %v452_v25 = vmul.f32 %v649_v12, %v450_v13  ;;  %v345_v30 = vadd.f32 %v343_v15, %v335_v22  ;;  %v413_v61 = vmul.f32 %v642_v53, %v411_v54  ;;  %v646_v63 = vld [vmem:[%s1094_s7 + $0x158] sm:$0xff]  ;;  %v652_v11 = vld [vmem:[%s1094_s7 + $0x188] sm:$0xff] }
  0x8f   : > { %v650_v7 = vld [vmem:[%s1094_s7 + $0x178] sm:$0xff]  ;;  %v443_v10 = vmul.f32 %v648_v3, %v441_v4  ;;  %v656_v19 = vld [vmem:[%s1094_s7 + $0x1a8] sm:$0xff] }
  0x90   : > { %v384_v48 = vadd.f32 %v382_v33, %v374_v40  ;;  %v462_v33 = vmul.f32 %v651_v20, %v460_v21  ;;  %v355_v38 = vadd.f32 %v353_v23, %v345_v30  ;;  %v461_v12 = vld [vmem:[#allocation5 + $0x188] sm:$0xff] }
  0x91   : > { %v654_v15 = vld [vmem:[%s1094_s7 + $0x198] sm:$0xff]  ;;  %v463_v18 = vmul.f32 %v652_v11, %v461_v12 }
  0x92   : > { %v394_v56 = vadd.f32 %v392_v41, %v384_v48  ;;  %v472_v41 = vmul.f32 %v653_v28, %v470_v29  ;;  %v365_v44 = vadd.f32 %v363_v31, %v355_v38  ;;  %v640_v48 = vld [vmem:[%s1094_s7 + $0x128] sm:$0xff] }
  0x93   : > { %v481_v20 = vld [vmem:[#allocation5 + $0x1a8] sm:$0xff] }
  0x94   : > { %v404_v0 = vadd.f32 %v402_v49, %v394_v56  ;;  %v401_v49 = vld [vmem:[#allocation5 + $0x128] sm:$0xff]  ;;  %v375_v50 = vadd.f32 %v373_v39, %v365_v44 }
  0x95   : > { %v403_v56 = vmul.f32 %v640_v48, %v401_v49 }
  0x96   : > { %v414_v8 = vadd.f32 %v412_v57, %v404_v0  ;;  %v385_v55 = vadd.f32 %v383_v45, %v375_v50  ;;  %v431_v0 = vld [vmem:[#allocation5 + $0x158] sm:$0xff] }
  0x97   : > { %v433_v6 = vmul.f32 %v646_v63, %v431_v0 }
  0x98   : > { %v424_v16 = vadd.f32 %v422_v1, %v414_v8  ;;  %v395_v60 = vadd.f32 %v393_v51, %v385_v55  ;;  %v451_v8 = vld [vmem:[#allocation5 + $0x178] sm:$0xff] }
  0x99   : > { %v453_v14 = vmul.f32 %v650_v7, %v451_v8 }
  0x9a   : > { %v434_v24 = vadd.f32 %v432_v9, %v424_v16  ;;  %v405_v1 = vadd.f32 %v403_v56, %v395_v60  ;;  %v471_v16 = vld [vmem:[#allocation5 + $0x198] sm:$0xff] }
  0x9b   : > { %v473_v22 = vmul.f32 %v654_v15, %v471_v16 }
  0x9c   : > { %v444_v32 = vadd.f32 %v442_v17, %v434_v24  ;;  %v415_v5 = vadd.f32 %v413_v61, %v405_v1  ;;  %v483_v24 = vmul.f32 %v656_v19, %v481_v20 }
  0x9e   : > { %v454_v40 = vadd.f32 %v452_v25, %v444_v32  ;;  %v425_v9 = vadd.f32 %v423_v2, %v415_v5 }
  0xa0   : > { %v464_v46 = vadd.f32 %v462_v33, %v454_v40  ;;  %v435_v13 = vadd.f32 %v433_v6, %v425_v9 }
  0xa2   : > { %v474_v52 = vadd.f32 %v472_v41, %v464_v46  ;;  %v445_v17 = vadd.f32 %v443_v10, %v435_v13 }
  0xa4   : > { %v484_v57 = vadd.f32 %v482_v47, %v474_v52  ;;  %v455_v21 = vadd.f32 %v453_v14, %v445_v17 }
  0xa6   : > { %v486_v62 = vmax.f32 %v484_v57, 0.0  ;;  %v465_v23 = vadd.f32 %v463_v18, %v455_v21 }
  0xa8   : > { %488 = vst [vmem:[%s1154_s26] sm:$0xff] %v486_v62  ;;  %v475_v25 = vadd.f32 %v473_v22, %v465_v23 }
  0xaa   : > { %v485_v26 = vadd.f32 %v483_v24, %v475_v25 }
  0xac   : > { %v487_v27 = vmax.f32 %v485_v26, 0.0 }
  0xae   : > { %489 = vst [vmem:[%s1154_s26 + $0x8] sm:$0xff] %v487_v27 }
  0xaf   : > { %835 = shalt.err (!%p832_p5)
}
  0xb0   : > { %s836_s9 = scalar_lea.hbm %s1169_s28, 256  ;;  %s840_s4 = scalar_lea.hbm %s1215_s3, 512 }
  0xb1   : > { %p837_p11 = scmp.ne.s32.totalorder %s1169_s28, %s836_s9  ;;  %p841_p6 = scmp.lt.u32.totalorder %s1169_s28, %s1215_s3 }
  0xb2   : > { %p842_p8 = scmp.lt.u32.totalorder %s840_s4, %s836_s9  ;;  %p844_p7 = scmp.lt.u32.totalorder %s836_s9, %s1169_s28 }
  0xb3   : > { %p838_p12 = pnand %p837_p11, %p1235_p9 }
  0xb4   : > { %p843_p13 = por %p842_p8, %p841_p6 }
  0xb5   : > { %p839_p3 = pneg %p838_p12 }
  0xb6   : > { %p845_p10 = por %p844_p7, %p843_p13 }
  0xb8   : > { %p846_p1 = pnand %p845_p10, %p839_p3 }
  0xba   : > { %849 = shalt.err (!%p846_p1)
}
  0xbb   : > { %676 = dma.vmem_to_hbm [thread:$0]  (%p1235_p9), %s1164_s19, 256, %s1169_s28, %s491_s22  }
  0xbc PF: > { %s517_s7 = sand.u32 1, %s880_s12   ;;  %p1236_p4 = scmp.ne.s32.totalorder %s1224_s25, 0 }
  0xbd   : > { %p1237_p0 = scmp.ge.s32.totalorder %s892_s15, 2  ;;  %s518_s23 = scalar_lea.sflag [#allocation4], %s517_s7 }
  0xbf   : > { %p690_p2 = pnand %p1237_p0, %p1236_p4 }
  0xc1   : > { %875 = dma.done.wait (!%p690_p2), %s518_s23, 256  }
  0xc2   : > { %877 = vsyncadd (!%p690_p2), %s518_s23, 4294967040  ;;  %p17_p5 = scmp.ge.s32.totalorder %s946_s18, 4   ;;  %s1238_s12 = smov %s884_s13 }
  0xc3   : > { %s1239_s13 = smov %s888_s14  ;;  %s1240_s14 = smov %s958_s21 }
  0xc4   : > { %s1241_s15 = smov %s946_s18  ;;  %19 = sbr.rel (!%p17_p5) target bundleno = 6 (0x6), region = 137 }
  0xcb   :  { %523 = vsyncpa [#allocation3], 1 }
  0xcc   :  { %525 = vsyncpa [#allocation3 + $0x1], 1 }
  0xcd   :  { %526 = vsyncpa [#allocation6], 1 }
  0xce   :  { %527 = vsyncpa [#allocation4], 1 }
  0xcf   :  { %529 = vsyncpa [#allocation4 + $0x1], 1 }

</bundles_post_ra>
